<compile_context>
chip_gen: v5e
topology: v5e:2x2
jax: 0.10.0
libtpu: 0.0.40
codegen_flags: <defaults>
</compile_context>

<pallas_src>
import functools

import jax
import jax.numpy as jnp
from jax.experimental import pallas as pl
from jax.experimental.pallas import tpu as pltpu

LN_EPS = 1e-5
_SQRT_2_OVER_PI = 0.7978845608028654
_VMEM_LIMIT = 32 * 1024 * 1024


def _round_up(x, m):
    return ((x + m - 1) // m) * m


def _row_tiling(rows):
    """Row tile (multiple of 8 f32 sublanes) and padded row count."""
    if rows > 128:
        tr = 128
        return _round_up(rows, tr), tr
    rp = _round_up(rows, 8)
    return rp, rp


# --------------------------------------------------------------------------- #
# Kernels
# --------------------------------------------------------------------------- #

def _ln_linear_kernel(x_ref, g_ref, b_ref, w_ref, bias_ref, o_ref, *, act):
    """o = act(LayerNorm(x) @ W + bias), f32 accumulation on the MXU."""
    x = x_ref[...].astype(jnp.float32)                     # (TR, Cin)
    mean = jnp.mean(x, axis=-1, keepdims=True)
    xc = x - mean
    var = jnp.mean(xc * xc, axis=-1, keepdims=True)
    y = xc * jax.lax.rsqrt(var + LN_EPS) * g_ref[...] + b_ref[...]
    acc = jnp.dot(y, w_ref[...], preferred_element_type=jnp.float32)
    acc = acc + bias_ref[...]
    if act == "gelu":
        acc = 0.5 * acc * (1.0 + jnp.tanh(_SQRT_2_OVER_PI * (acc + 0.044715 * acc * acc * acc)))
    o_ref[...] = acc.astype(o_ref.dtype)


def _linear_residual_kernel(x_ref, res_ref, w_ref, bias_ref, o_ref):
    """o = residual + (x @ W + bias), f32 accumulation on the MXU."""
    acc = jnp.dot(x_ref[...], w_ref[...], preferred_element_type=jnp.float32)
    acc = acc + bias_ref[...] + res_ref[...].astype(jnp.float32)
    o_ref[...] = acc.astype(o_ref.dtype)


def _attention_kernel(q_ref, k_ref, v_ref, o_ref, *, scale):
    """One (batch*head) slice: softmax(q @ k^T * scale) @ v."""
    q = q_ref[0].astype(jnp.float32)                       # (N, Dh)
    k = k_ref[0].astype(jnp.float32)
    v = v_ref[0]
    # q @ k^T via transposed contraction -> no explicit in-kernel transpose.
    s = jax.lax.dot_general(q, k, (((1,), (1,)), ((), ())),
                            preferred_element_type=jnp.float32) * scale
    m = jnp.max(s, axis=-1, keepdims=True)
    p = jnp.exp(s - m)
    p = p / jnp.sum(p, axis=-1, keepdims=True)
    out = jnp.dot(p, v.astype(jnp.float32), preferred_element_type=jnp.float32)
    o_ref[0] = out.astype(o_ref.dtype)


# --------------------------------------------------------------------------- #
# pallas_call wrappers
# --------------------------------------------------------------------------- #

def _ln_linear(x2d, gamma, beta, w_pad, bias_pad, out_dim, act):
    """x2d: (R, Cin); gamma/beta: (1, Cin); w_pad: (Cin, Cout_p); bias_pad: (1, Cout_p)."""
    R, Cin = x2d.shape
    Cout_p = w_pad.shape[1]
    Rp, TR = _row_tiling(R)
    x_p = jnp.pad(x2d, ((0, Rp - R), (0, 0))) if Rp != R else x2d

    out = pl.pallas_call(
        functools.partial(_ln_linear_kernel, act=act),
        out_shape=jax.ShapeDtypeStruct((Rp, Cout_p), x2d.dtype),
        grid_spec=pltpu.PrefetchScalarGridSpec(
            num_scalar_prefetch=0,
            grid=(Rp // TR,),
            in_specs=[
                pl.BlockSpec((TR, Cin), lambda i: (i, 0)),      # activations, tiled over rows
                pl.BlockSpec((1, Cin), lambda i: (0, 0)),       # LN gamma (resident)
                pl.BlockSpec((1, Cin), lambda i: (0, 0)),       # LN beta (resident)
                pl.BlockSpec((Cin, Cout_p), lambda i: (0, 0)),  # weight (resident)
                pl.BlockSpec((1, Cout_p), lambda i: (0, 0)),    # bias (resident)
            ],
            out_specs=pl.BlockSpec((TR, Cout_p), lambda i: (i, 0)),
        ),
        compiler_params=pltpu.CompilerParams(
            dimension_semantics=("parallel",),
            vmem_limit_bytes=_VMEM_LIMIT,
        ),
    )(x_p, gamma, beta, w_pad, bias_pad)

    if Rp != R or Cout_p != out_dim:
        out = out[:R, :out_dim]
    return out


def _linear_residual(x2d, res2d, w_pad, bias_pad, out_dim):
    """x2d: (R, Cin); res2d: (R, out_dim); w_pad: (Cin, Cout_p); bias_pad: (1, Cout_p)."""
    R, Cin = x2d.shape
    Cout_p = w_pad.shape[1]
    Rp, TR = _row_tiling(R)
    x_p = jnp.pad(x2d, ((0, Rp - R), (0, 0))) if Rp != R else x2d
    res_p = res2d
    if Rp != R or Cout_p != out_dim:
        res_p = jnp.pad(res2d, ((0, Rp - R), (0, Cout_p - out_dim)))

    out = pl.pallas_call(
        _linear_residual_kernel,
        out_shape=jax.ShapeDtypeStruct((Rp, Cout_p), x2d.dtype),
        grid_spec=pltpu.PrefetchScalarGridSpec(
            num_scalar_prefetch=0,
            grid=(Rp // TR,),
            in_specs=[
                pl.BlockSpec((TR, Cin), lambda i: (i, 0)),
                pl.BlockSpec((TR, Cout_p), lambda i: (i, 0)),
                pl.BlockSpec((Cin, Cout_p), lambda i: (0, 0)),  # weight (resident)
                pl.BlockSpec((1, Cout_p), lambda i: (0, 0)),    # bias (resident)
            ],
            out_specs=pl.BlockSpec((TR, Cout_p), lambda i: (i, 0)),
        ),
        compiler_params=pltpu.CompilerParams(
            dimension_semantics=("parallel",),
            vmem_limit_bytes=_VMEM_LIMIT,
        ),
    )(x_p, res_p, w_pad, bias_pad)

    if Rp != R or Cout_p != out_dim:
        out = out[:R, :out_dim]
    return out


def _attention_core(q, k, v, scale):
    """q, k, v: (B*H, N, Dh) -> softmax(q k^T * scale) @ v, one grid step per head slice."""
    BH, N, Dh = q.shape
    return pl.pallas_call(
        functools.partial(_attention_kernel, scale=scale),
        out_shape=jax.ShapeDtypeStruct((BH, N, Dh), q.dtype),
        grid_spec=pltpu.PrefetchScalarGridSpec(
            num_scalar_prefetch=0,
            grid=(BH,),
            in_specs=[pl.BlockSpec((1, N, Dh), lambda i: (i, 0, 0))] * 3,
            out_specs=pl.BlockSpec((1, N, Dh), lambda i: (i, 0, 0)),
        ),
        compiler_params=pltpu.CompilerParams(
            dimension_semantics=("parallel",),
            vmem_limit_bytes=_VMEM_LIMIT,
        ),
    )(q, k, v)


# --------------------------------------------------------------------------- #
# Transformer blocks / container
# --------------------------------------------------------------------------- #

def _mha_prenorm_block(x, p, num_heads):
    """MultiheadAttentionWithPreNorm (eval): x + Proj(MHA(LayerNorm(x)))."""
    B, N, C = x.shape
    Dh = C // num_heads
    x2 = x.reshape(B * N, C)

    qkv = _ln_linear(x2, p["ln_g"], p["ln_b"], p["w_qkv"], p["b_qkv"],
                     out_dim=3 * C, act="none")                          # (B*N, 3C)
    qkv = qkv.reshape(B, N, 3, num_heads, Dh).transpose(2, 0, 3, 1, 4)   # (3, B, H, N, Dh)
    q = qkv[0].reshape(B * num_heads, N, Dh)
    k = qkv[1].reshape(B * num_heads, N, Dh)
    v = qkv[2].reshape(B * num_heads, N, Dh)

    attn_out = _attention_core(q, k, v, scale=Dh ** -0.5)                # (B*H, N, Dh)
    attn_out = (attn_out.reshape(B, num_heads, N, Dh)
                .transpose(0, 2, 1, 3).reshape(B * N, C))

    out = _linear_residual(attn_out, x2, p["w_proj"], p["b_proj"], out_dim=C)
    return out.reshape(B, N, C)


def _ffn_prenorm_block(x, p):
    """FFNWithPreNorm (eval, num_layers=2): x + FC2(GELU(FC1(LayerNorm(x))))."""
    B, N, C = x.shape
    hidden = p["w2"].shape[0]
    x2 = x.reshape(B * N, C)
    h = _ln_linear(x2, p["ln_g"], p["ln_b"], p["w1"], p["b1"],
                   out_dim=hidden, act="gelu")                           # (B*N, hidden)
    out = _linear_residual(h, x2, p["w2"], p["b2"], out_dim=C)
    return out.reshape(B, N, C)


def transformer_container_forward(x, params, *, num_heads):
    """TransformerContainer.forward (eval, operator_order=('self_attn', 'ffn'))."""
    for layer in params["layers"]:
        x = _mha_prenorm_block(x, layer["attn"], num_heads)
        x = _ffn_prenorm_block(x, layer["ffn"])
    return x


# --------------------------------------------------------------------------- #
# Params (pre-transposed + lane-dense-padded once, at init time)
# --------------------------------------------------------------------------- #

def init_params(key, *, num_transformer_layers, embed_dims, num_heads,
                hidden_channels, dtype=jnp.float32):
    del num_heads  # only needed at forward time
    C = embed_dims
    c_pad = _round_up(C, 128)
    qkv_pad = _round_up(3 * C, 128)
    hid_pad = _round_up(hidden_channels, 128)

    def linear(k, cin, cout, cout_pad, std=0.02):
        kw, kb = jax.random.split(k)
        w = std * jax.random.normal(kw, (cin, cout), dtype=dtype)    # stored as (in, out)
        b = std * jax.random.normal(kb, (cout,), dtype=dtype)
        w = jnp.pad(w, ((0, 0), (0, cout_pad - cout)))               # lane-dense pad, once
        b = jnp.pad(b, (0, cout_pad - cout)).reshape(1, cout_pad)
        return w, b

    layers = []
    for lk in jax.random.split(key, num_transformer_layers):
        k1, k2, k3, k4 = jax.random.split(lk, 4)
        w_qkv, b_qkv = linear(k1, C, 3 * C, qkv_pad)
        w_proj, b_proj = linear(k2, C, C, c_pad)
        w1, b1 = linear(k3, C, hidden_channels, hid_pad)
        w2, b2 = linear(k4, hidden_channels, C, c_pad)
        attn = dict(ln_g=jnp.ones((1, C), dtype), ln_b=jnp.zeros((1, C), dtype),
                    w_qkv=w_qkv, b_qkv=b_qkv, w_proj=w_proj, b_proj=b_proj)
        ffn = dict(ln_g=jnp.ones((1, C), dtype), ln_b=jnp.zeros((1, C), dtype),
                   w1=w1, b1=b1, w2=w2, b2=b2)
        layers.append(dict(attn=attn, ffn=ffn))
    return dict(layers=layers)


# --------------------------------------------------------------------------- #
# Pure-JAX reference (same math, high-precision dots)
# --------------------------------------------------------------------------- #

def reference_forward(x, params, *, num_heads):
    hi = jax.lax.Precision.HIGHEST

    def ln(y, g, b):
        mu = jnp.mean(y, axis=-1, keepdims=True)
        var = jnp.mean((y - mu) ** 2, axis=-1, keepdims=True)
        return (y - mu) * jax.lax.rsqrt(var + LN_EPS) * g + b

    def gelu(y):
        return 0.5 * y * (1.0 + jnp.tanh(_SQRT_2_OVER_PI * (y + 0.044715 * y ** 3)))

    def linear(y, w_pad, b_pad, out_dim):
        return jnp.dot(y, w_pad[:, :out_dim], precision=hi) + b_pad[0, :out_dim]

    B, N, C = x.shape
    Dh = C // num_heads
    for layer in params["layers"]:
        pa = layer["attn"]
        y = ln(x, pa["ln_g"][0], pa["ln_b"][0])
        qkv = linear(y, pa["w_qkv"], pa["b_qkv"], 3 * C)
        qkv = qkv.reshape(B, N, 3, num_heads, Dh).transpose(2, 0, 3, 1, 4)
        q, k, v = qkv[0], qkv[1], qkv[2]
        s = jnp.einsum("bhnd,bhmd->bhnm", q, k, precision=hi) * (Dh ** -0.5)
        p = jax.nn.softmax(s, axis=-1)
        o = jnp.einsum("bhnm,bhmd->bhnd", p, v, precision=hi)
        o = o.transpose(0, 2, 1, 3).reshape(B, N, C)
        x = x + linear(o, pa["w_proj"], pa["b_proj"], C)

        pf = layer["ffn"]
        y = ln(x, pf["ln_g"][0], pf["ln_b"][0])
        hidden = pf["w2"].shape[0]
        h = gelu(linear(y, pf["w1"], pf["b1"], hidden))
        x = x + linear(h, pf["w2"], pf["b2"], C)
    return x


if __name__ == "__main__":
    key = jax.random.PRNGKey(0)
    k_x, k_p = jax.random.split(key)

    # Small shapes consistent with the module.
    batch = 2
    num_frames = 4            # unused by the self_attn/ffn operator order
    num_patches = 4           # patches per frame
    seq = 1 + num_frames * num_patches   # cls token + p*t tokens = 17 (exercises row-tail padding)
    embed_dims = 128
    num_heads = 2
    hidden_channels = 256
    num_transformer_layers = 2

    x = jax.random.normal(k_x, (batch, seq, embed_dims), dtype=jnp.float32)
    params = init_params(
        k_p,
        num_transformer_layers=num_transformer_layers,
        embed_dims=embed_dims,
        num_heads=num_heads,
        hidden_channels=hidden_channels,
    )

    out = transformer_container_forward(x, params, num_heads=num_heads)
    out = jax.block_until_ready(out)

    ref = reference_forward(x, params, num_heads=num_heads)
    assert out.shape == (batch, seq, embed_dims)
    assert jnp.allclose(out, ref, atol=1e-2, rtol=1e-2), float(jnp.max(jnp.abs(out - ref)))

    print("KERNEL_OK")
</pallas_src>

<mosaic_0001>
module attributes {stable_mosaic.version = 11 : i64} {
  func.func @_ln_linear_kernel(%arg0: i32, %arg1: memref<40x128xf32, #tpu.memory_space<vmem>>, %arg2: memref<1x128xf32, #tpu.memory_space<vmem>>, %arg3: memref<1x128xf32, #tpu.memory_space<vmem>>, %arg4: memref<128x384xf32, #tpu.memory_space<vmem>>, %arg5: memref<1x384xf32, #tpu.memory_space<vmem>>, %arg6: memref<40x384xf32, #tpu.memory_space<vmem>>) attributes {dimension_semantics = [#tpu.dimension_semantics<parallel>], iteration_bounds = array<i64: 1>, scalar_prefetch = 0 : i64, scratch_operands = 0 : i64, tpu.core_type = #tpu.core_type<tc>, window_params = [{transform_indices = @transform_0, window_bounds = array<i64: 40, 128>}, {pipeline_mode = #tpu.pipeline_mode<synchronous>, transform_indices = @transform_1, window_bounds = array<i64: 1, 128>}, {pipeline_mode = #tpu.pipeline_mode<synchronous>, transform_indices = @transform_2, window_bounds = array<i64: 1, 128>}, {pipeline_mode = #tpu.pipeline_mode<synchronous>, transform_indices = @transform_3, window_bounds = array<i64: 128, 384>}, {pipeline_mode = #tpu.pipeline_mode<synchronous>, transform_indices = @transform_4, window_bounds = array<i64: 1, 384>}, {transform_indices = @transform_5, window_bounds = array<i64: 40, 384>}]} {
    %c0 = arith.constant 0 : index
    %c0_0 = arith.constant 0 : index
    %0 = vector.load %arg1[%c0, %c0_0] : memref<40x128xf32, #tpu.memory_space<vmem>>, vector<40x128xf32>
    %cst = arith.constant dense<0.000000e+00> : vector<40xf32>
    %1 = vector.multi_reduction <add>, %0, %cst [1] : vector<40x128xf32> to vector<40xf32>
    %2 = vector.shape_cast %1 : vector<40xf32> to vector<40x1xf32>
    %cst_1 = arith.constant 1.280000e+02 : f32
    %3 = vector.broadcast %cst_1 : f32 to vector<40x1xf32>
    %4 = arith.divf %2, %3 : vector<40x1xf32>
    %5 = vector.broadcast %4 : vector<40x1xf32> to vector<40x128xf32>
    %6 = arith.subf %0, %5 : vector<40x128xf32>
    %7 = arith.mulf %6, %6 : vector<40x128xf32>
    %cst_2 = arith.constant dense<0.000000e+00> : vector<40xf32>
    %8 = vector.multi_reduction <add>, %7, %cst_2 [1] : vector<40x128xf32> to vector<40xf32>
    %9 = vector.shape_cast %8 : vector<40xf32> to vector<40x1xf32>
    %cst_3 = arith.constant 1.280000e+02 : f32
    %10 = vector.broadcast %cst_3 : f32 to vector<40x1xf32>
    %11 = arith.divf %9, %10 : vector<40x1xf32>
    %cst_4 = arith.constant 9.99999974E-6 : f32
    %12 = vector.broadcast %cst_4 : f32 to vector<40x1xf32>
    %13 = arith.addf %11, %12 : vector<40x1xf32>
    %14 = math.rsqrt %13 : vector<40x1xf32>
    %15 = vector.broadcast %14 : vector<40x1xf32> to vector<40x128xf32>
    %16 = arith.mulf %6, %15 : vector<40x128xf32>
    %c0_5 = arith.constant 0 : index
    %c0_6 = arith.constant 0 : index
    %17 = vector.load %arg2[%c0_5, %c0_6] : memref<1x128xf32, #tpu.memory_space<vmem>>, vector<1x128xf32>
    %18 = vector.broadcast %17 : vector<1x128xf32> to vector<40x128xf32>
    %19 = arith.mulf %16, %18 : vector<40x128xf32>
    %c0_7 = arith.constant 0 : index
    %c0_8 = arith.constant 0 : index
    %20 = vector.load %arg3[%c0_7, %c0_8] : memref<1x128xf32, #tpu.memory_space<vmem>>, vector<1x128xf32>
    %21 = vector.broadcast %20 : vector<1x128xf32> to vector<40x128xf32>
    %22 = arith.addf %19, %21 : vector<40x128xf32>
    %c0_9 = arith.constant 0 : index
    %c0_10 = arith.constant 0 : index
    %23 = vector.load %arg4[%c0_9, %c0_10] : memref<128x384xf32, #tpu.memory_space<vmem>>, vector<128x384xf32>
    %cst_11 = arith.constant dense<0.000000e+00> : vector<40x384xf32>
    %24 = tpu.matmul %22, %23, %cst_11 {dimension_numbers = #tpu.dot_dimension_numbers<[1], [0], [0], [1], [0, 0, 1, 1], [], []>} : vector<40x128xf32>, vector<128x384xf32>, vector<40x384xf32> -> vector<40x384xf32>
    %c0_12 = arith.constant 0 : index
    %c0_13 = arith.constant 0 : index
    %25 = vector.load %arg5[%c0_12, %c0_13] : memref<1x384xf32, #tpu.memory_space<vmem>>, vector<1x384xf32>
    %26 = vector.broadcast %25 : vector<1x384xf32> to vector<40x384xf32>
    %27 = arith.addf %24, %26 : vector<40x384xf32>
    %c0_14 = arith.constant 0 : index
    %c0_15 = arith.constant 0 : index
    %28 = vector.load %arg6[%c0_14, %c0_15] : memref<40x384xf32, #tpu.memory_space<vmem>>, vector<40x384xf32>
    tpu.vector_store %arg6[%c0_14, %c0_15], %27 {strides = array<i32>} : memref<40x384xf32, #tpu.memory_space<vmem>>, vector<40x384xf32>,
    return
  }
  func.func @transform_0(%arg0: i32) -> (i32, i32) {
    %c0_i32 = arith.constant 0 : i32
    %c0_i32_0 = arith.constant 0 : i32
    return %arg0, %c0_i32 : i32, i32
  }
  func.func @transform_1(%arg0: i32) -> (i32, i32) {
    %c0_i32 = arith.constant 0 : i32
    %c0_i32_0 = arith.constant 0 : i32
    %c0_i32_1 = arith.constant 0 : i32
    return %c0_i32, %c0_i32_0 : i32, i32
  }
  func.func @transform_2(%arg0: i32) -> (i32, i32) {
    %c0_i32 = arith.constant 0 : i32
    %c0_i32_0 = arith.constant 0 : i32
    %c0_i32_1 = arith.constant 0 : i32
    return %c0_i32, %c0_i32_0 : i32, i32
  }
  func.func @transform_3(%arg0: i32) -> (i32, i32) {
    %c0_i32 = arith.constant 0 : i32
    %c0_i32_0 = arith.constant 0 : i32
    %c0_i32_1 = arith.constant 0 : i32
    return %c0_i32, %c0_i32_0 : i32, i32
  }
  func.func @transform_4(%arg0: i32) -> (i32, i32) {
    %c0_i32 = arith.constant 0 : i32
    %c0_i32_0 = arith.constant 0 : i32
    %c0_i32_1 = arith.constant 0 : i32
    return %c0_i32, %c0_i32_0 : i32, i32
  }
  func.func @transform_5(%arg0: i32) -> (i32, i32) {
    %c0_i32 = arith.constant 0 : i32
    %c0_i32_0 = arith.constant 0 : i32
    return %arg0, %c0_i32 : i32, i32
  }
}

</mosaic_0001>

<bundles_post_ra>
// kernel: tpu_custom_call.1
= control target key start
LH: loop header
LB: loop body
LE: loop exit
PB: predicated region body
PF: predicated region fallthrough
CT: control target
= control target key end

     0   :  { %10 = vsyncpa [#allocation3], 0  ;;  %s673_s0 = inlined_call_operand.hbm [shape: f32[40,128], index: 0, kind: input, shape index: {}]   ;;  %s674_s1 = inlined_call_operand.hbm [shape: f32[1,128], index: 1, kind: input, shape index: {}]   ;;  %s675_s2 = inlined_call_operand.hbm [shape: f32[1,128], index: 2, kind: input, shape index: {}]   ;;  %s676_s3 = inlined_call_operand.hbm [shape: f32[128,384], index: 3, kind: input, shape index: {}]   ;;  %s677_s4 = inlined_call_operand.vmem [shape: f32[1,384], index: 4, kind: input, shape index: {}]   ;;  %s678_s5 = inlined_call_operand.hbm [shape: f32[40,384], index: 5, kind: output, shape index: {}]  }
   0x1   :  { %11 = vsyncpa [#allocation6], 0 }
   0x2   :  { %12 = vsyncpa [#allocation9], 0  ;;  %s32_s20 = sshll.u32 %s674_s1, 4  ;;  %s33_s20 = int_to_ptr.hbm [resolvable:$true] %s32_s20 }
   0x3   :  { %13 = vsyncpa [#allocation4], 0  ;;  %s566_s21 = smov [#allocation5]   ;;  %s18_s25 = sshll.u32 %s673_s0, 4  ;;  %s19_s25 = int_to_ptr.hbm [resolvable:$true] %s18_s25 }
   0x4   :  { %s34_s22 = sshll.u32 %s566_s21, 4  ;;  %s567_s26 = smov [#allocation2]   ;;  %s35_s22 = int_to_ptr.vmem [resolvable:$true] %s34_s22 }
   0x5   :  { %37 = dma.hbm_to_vmem [thread:$0]  %s33_s20, 16, %s35_s22, [#allocation6]  }
   0x6   :  { %s20_s27 = sshll.u32 %s567_s26, 4  ;;  %s568_s28 = smov 128   ;;  %s21_s27 = int_to_ptr.vmem [resolvable:$true] %s20_s27 }
   0x7   :  { %s569_s29 = smov 8   ;;  %s43_s1 = sshll.u32 %s675_s2, 4  ;;  %s44_s1 = int_to_ptr.hbm [resolvable:$true] %s43_s1 }
   0x8   :  { %26 = dma.hbm_to_vmem [thread:$0]  %s19_s25, 640, %s21_s27, [#allocation3], %s568_s28, %s568_s28, %s569_s29  }
   0x9   :  { %s570_s7 = smov [#allocation7]   ;;  %s53_s0 = sshll.u32 %s676_s3, 4  ;;  %s54_s0 = int_to_ptr.hbm [resolvable:$true] %s53_s0 }
   0xa   :  { %s45_s8 = sshll.u32 %s570_s7, 4  ;;  %s571_s11 = smov [#allocation8]   ;;  %s46_s8 = int_to_ptr.vmem [resolvable:$true] %s45_s8 }
   0xb   :  { %48 = dma.hbm_to_vmem [thread:$0]  %s44_s1, 16, %s46_s8, [#allocation6]  }
   0xc   :  { %s55_s12 = sshll.u32 %s571_s11, 4  ;;  %s572_s13 = smov 384   ;;  %s56_s12 = int_to_ptr.vmem [resolvable:$true] %s55_s12 }
   0xd   :  { %s573_s14 = smov 24  }
   0xe   :  { %61 = dma.hbm_to_vmem [thread:$0]  %s54_s0, 6144, %s56_s12, [#allocation9], %s572_s13, %s572_s13, %s573_s14  }
   0xf   :  { %558 = dma.done.wait [#allocation3], 640  }
  0x10   :  { %559 = vsyncadd [#allocation3], 4294966656 }
  0x11   :  { %560 = dma.done.wait [#allocation6], 32  }
  0x12   :  { %561 = vsyncadd [#allocation6], 4294967264 }
  0x13   :  { %562 = dma.done.wait [#allocation9], 6144  }
  0x14   :  { %563 = vsyncadd [#allocation9], 4294961152  ;;  %v82_v0 = vld [vmem:[#allocation2 + $0x10] sm:$0xff]  ;;  %v80_v1 = vld [vmem:[#allocation2] sm:$0xff]  ;;  %v574_v5 = vmov 128.0   ;;  %s383_s18 = sshll.u32 %s678_s5, 4  ;;  %s384_s18 = int_to_ptr.hbm [resolvable:$true] %s383_s18 }
  0x15   :  { %89 = vadd.xlane.f32.xlu1 %v82_v0  ;;  %85 = vadd.xlane.f32.xlu0 %v80_v1  ;;  %v84_v2 = vld [vmem:[#allocation2 + $0x20] sm:$0xff]  ;;  %v83_v3 = vld [vmem:[#allocation2 + $0x18] sm:$0xff]  ;;  %v81_v4 = vld [vmem:[#allocation2 + $0x8] sm:$0xff]  ;;  %426 = vrcp.f32 %v574_v5 }
  0x16   :  { %93 = vadd.xlane.f32.xlu2 %v84_v2  ;;  %v255_v10 = vld [vmem:[#allocation8 + $0x168] sm:$0xff]  ;;  %v256_v11 = vld [vmem:[#allocation8 + $0x170] sm:$0xff]  ;;  %v257_v12 = vld [vmem:[#allocation8 + $0x178] sm:$0xff] }
  0x17   :  { %266 = vmatpush.msra.mxu0 %v255_v10  ;;  %298 = vmatpush.msra.mxu1 %v256_v11  ;;  %v252_v13 = vld [vmem:[#allocation8 + $0x150] sm:$0xff]  ;;  %v253_v14 = vld [vmem:[#allocation8 + $0x158] sm:$0xff]  ;;  %v254_v15 = vld [vmem:[#allocation8 + $0x160] sm:$0xff] }
  0x18   :  { %330 = vmatpush.msra.mxu2 %v257_v12  ;;  %398 = vmatpush.msra.mxu3 %v255_v10  ;;  %v249_v38 = vld [vmem:[#allocation8 + $0x138] sm:$0xff]  ;;  %v250_v39 = vld [vmem:[#allocation8 + $0x140] sm:$0xff]  ;;  %v251_v40 = vld [vmem:[#allocation8 + $0x148] sm:$0xff] }
  0x19   :  { %267 = vmatpush.msra.mxu0 %v252_v13  ;;  %299 = vmatpush.msra.mxu1 %v253_v14  ;;  %v246_v41 = vld [vmem:[#allocation8 + $0x120] sm:$0xff]  ;;  %v247_v42 = vld [vmem:[#allocation8 + $0x128] sm:$0xff]  ;;  %v248_v43 = vld [vmem:[#allocation8 + $0x130] sm:$0xff] }
  0x1a   :  { %331 = vmatpush.msra.mxu2 %v254_v15  ;;  %399 = vmatpush.msra.mxu3 %v252_v13  ;;  %v243_v44 = vld [vmem:[#allocation8 + $0x108] sm:$0xff]  ;;  %v244_v45 = vld [vmem:[#allocation8 + $0x110] sm:$0xff]  ;;  %v245_v46 = vld [vmem:[#allocation8 + $0x118] sm:$0xff] }
  0x1b   :  { %v427_v6 = vpop.eup %426  ;;  %268 = vmatpush.msra.mxu0 %v249_v38  ;;  %300 = vmatpush.msra.mxu1 %v250_v39  ;;  %v240_v47 = vld [vmem:[#allocation8 + $0xf0] sm:$0xff]  ;;  %v241_v48 = vld [vmem:[#allocation8 + $0xf8] sm:$0xff]  ;;  %v242_v49 = vld [vmem:[#allocation8 + $0x100] sm:$0xff] }
  0x1c   :  { %v96_v7 = vmul.f32 128.0, %v427_v6  ;;  %vm100_vm0 = vweird.f32 %v427_v6  ;;  %332 = vmatpush.msra.mxu2 %v251_v40  ;;  %400 = vmatpush.msra.mxu3 %v249_v38  ;;  %v237_v50 = vld [vmem:[#allocation8 + $0xd8] sm:$0xff]  ;;  %v238_v51 = vld [vmem:[#allocation8 + $0xe0] sm:$0xff]  ;;  %v239_v52 = vld [vmem:[#allocation8 + $0xe8] sm:$0xff] }
  0x1d   :  { %91 = vadd.xlane.f32.xlu1 %v83_v3  ;;  %87 = vadd.xlane.f32.xlu0 %v81_v4  ;;  %v234_v53 = vld [vmem:[#allocation8 + $0xc0] sm:$0xff]  ;;  %v235_v54 = vld [vmem:[#allocation8 + $0xc8] sm:$0xff]  ;;  %v236_v55 = vld [vmem:[#allocation8 + $0xd0] sm:$0xff] }
  0x1e   :  { %v97_v8 = vsub.f32 1.0, %v96_v7  ;;  %269 = vmatpush.msra.mxu0 %v246_v41  ;;  %301 = vmatpush.msra.mxu1 %v247_v42  ;;  %v231_v56 = vld [vmem:[#allocation8 + $0xa8] sm:$0xff]  ;;  %v232_v57 = vld [vmem:[#allocation8 + $0xb0] sm:$0xff]  ;;  %v233_v58 = vld [vmem:[#allocation8 + $0xb8] sm:$0xff] }
  0x1f   :  { %333 = vmatpush.msra.mxu2 %v248_v43  ;;  %401 = vmatpush.msra.mxu3 %v246_v41  ;;  %v228_v59 = vld [vmem:[#allocation8 + $0x90] sm:$0xff]  ;;  %v229_v60 = vld [vmem:[#allocation8 + $0x98] sm:$0xff]  ;;  %v230_v61 = vld [vmem:[#allocation8 + $0xa0] sm:$0xff] }
  0x20   :  { %v98_v9 = vmul.f32 %v427_v6, %v97_v8  ;;  %270 = vmatpush.msra.mxu0 %v243_v44  ;;  %302 = vmatpush.msra.mxu1 %v244_v45  ;;  %v225_v62 = vld [vmem:[#allocation8 + $0x78] sm:$0xff]  ;;  %v226_v63 = vld [vmem:[#allocation8 + $0x80] sm:$0xff]  ;;  %v220_v5 = vld [vmem:[#allocation8 + $0x50] sm:$0xff] }
  0x21   :  { %334 = vmatpush.msra.mxu2 %v245_v46  ;;  %402 = vmatpush.msra.mxu3 %v243_v44  ;;  %v216_v7 = vld [vmem:[#allocation8 + $0x30] sm:$0xff]  ;;  %v217_v8 = vld [vmem:[#allocation8 + $0x38] sm:$0xff]  ;;  %v214_v11 = vld [vmem:[#allocation8 + $0x20] sm:$0xff] }
  0x22   :  { %v99_v16 = vadd.f32 %v427_v6, %v98_v9  ;;  %271 = vmatpush.msra.mxu0 %v240_v47  ;;  %303 = vmatpush.msra.mxu1 %v241_v48  ;;  %v218_v9 = vld [vmem:[#allocation8 + $0x40] sm:$0xff]  ;;  %v213_v10 = vld [vmem:[#allocation8 + $0x18] sm:$0xff]  ;;  %v215_v12 = vld [vmem:[#allocation8 + $0x28] sm:$0xff] }
  0x23   :  { %335 = vmatpush.msra.mxu2 %v242_v49  ;;  %403 = vmatpush.msra.mxu3 %v240_v47  ;;  %v210_v13 = vld [vmem:[#allocation8] sm:$0xff]  ;;  %v211_v14 = vld [vmem:[#allocation8 + $0x8] sm:$0xff]  ;;  %v212_v15 = vld [vmem:[#allocation8 + $0x10] sm:$0xff] }
  0x24   :  { %v621_v17 = vsel %vm100_vm0, %v427_v6, %v99_v16  ;;  %272 = vmatpush.msra.mxu0 %v237_v50  ;;  %304 = vmatpush.msra.mxu1 %v238_v51  ;;  %v221_v6 = vld [vmem:[#allocation8 + $0x58] sm:$0xff] }
  0x25   :  { %336 = vmatpush.msra.mxu2 %v239_v52  ;;  %404 = vmatpush.msra.mxu3 %v237_v50  ;;  %v424_v51 = vld [vmem:[#allocation5] ss:$0 sm:$0xff] }
  0x26   :  { %273 = vmatpush.msra.mxu0 %v234_v53  ;;  %305 = vmatpush.msra.mxu1 %v235_v54 }
  0x27   :  { %337 = vmatpush.msra.mxu2 %v236_v55  ;;  %405 = vmatpush.msra.mxu3 %v234_v53  ;;  %v425_v55 = vld [vmem:[#allocation7] ss:$0 sm:$0xff] }
  0x28   :  { %274 = vmatpush.msra.mxu0 %v231_v56  ;;  %306 = vmatpush.msra.mxu1 %v232_v57 }
  0x29   :  { %338 = vmatpush.msra.mxu2 %v233_v58  ;;  %406 = vmatpush.msra.mxu3 %v231_v56 }
  0x2a   :  { %275 = vmatpush.msra.mxu0 %v228_v59  ;;  %307 = vmatpush.msra.mxu1 %v229_v60 }
  0x2b   :  { %339 = vmatpush.msra.mxu2 %v230_v61  ;;  %407 = vmatpush.msra.mxu3 %v228_v59 }
  0x2c   :  { %276 = vmatpush.msra.mxu0 %v225_v62  ;;  %308 = vmatpush.msra.mxu1 %v226_v63 }
  0x2d   :  { %408 = vmatpush.msra.mxu3 %v225_v62 }
  0x88   :  { %v90_v18 = vpop.xlane.xlu1 %89  ;;  %v86_v19 = vpop.xlane.xlu0 %85 }
  0x89   :  { %v104_v20 = vmul.f32 %v621_v17, %v90_v18  ;;  %v102_v21 = vmul.f32 %v621_v17, %v86_v19  ;;  %v94_v26 = vpop.xlane.xlu2 %93 }
  0x8a   :  { %v106_v33 = vmul.f32 %v621_v17, %v94_v26 }
  0x8b   :  { %v625_v22 = vsub.f32 %v82_v0, %v104_v20  ;;  %v627_v23 = vsub.f32 %v80_v1, %v102_v21  ;;  %v227_v0 = vld [vmem:[#allocation8 + $0x88] sm:$0xff]  ;;  %v222_v1 = vld [vmem:[#allocation8 + $0x60] sm:$0xff] }
  0x8c   :  { %v644_v36 = vsub.f32 %v84_v2, %v106_v33  ;;  %340 = vmatpush.msra.mxu2 %v227_v0  ;;  %v223_v2 = vld [vmem:[#allocation8 + $0x68] sm:$0xff]  ;;  %277 = vmatpush.msra.mxu0 %v222_v1 }
  0x8d   :  { %v114_v24 = vmul.f32 %v625_v22, %v625_v22  ;;  %v112_v25 = vmul.f32 %v627_v23, %v627_v23  ;;  %309 = vmatpush.msra.mxu1 %v223_v2  ;;  %409 = vmatpush.msra.mxu3 %v222_v1 }
  0x8e   :  { %v116_v37 = vmul.f32 %v644_v36, %v644_v36 }
  0x8f   :  { %121 = vadd.xlane.f32.xlu1 %v114_v24  ;;  %117 = vadd.xlane.f32.xlu2 %v112_v25 }
  0x90   :  { %v92_v27 = vpop.xlane.xlu1 %91  ;;  %v88_v28 = vpop.xlane.xlu0 %87  ;;  %310 = vmatpush.msra.mxu1 %v220_v5 }
  0x91   :  { %v105_v29 = vmul.f32 %v621_v17, %v92_v27  ;;  %v103_v30 = vmul.f32 %v621_v17, %v88_v28 }
  0x92   :  { %311 = vmatpush.msra.mxu1 %v217_v8 }
  0x93   :  { %v635_v31 = vsub.f32 %v83_v3, %v105_v29  ;;  %v637_v32 = vsub.f32 %v81_v4, %v103_v30  ;;  %v224_v3 = vld [vmem:[#allocation8 + $0x70] sm:$0xff]  ;;  %v219_v4 = vld [vmem:[#allocation8 + $0x48] sm:$0xff] }
  0x94   :  { %341 = vmatpush.msra.mxu2 %v224_v3  ;;  %278 = vmatpush.msra.mxu0 %v219_v4 }
  0x95   :  { %v115_v34 = vmul.f32 %v635_v31, %v635_v31  ;;  %v113_v35 = vmul.f32 %v637_v32, %v637_v32  ;;  %410 = vmatpush.msra.mxu3 %v219_v4  ;;  %312 = vmatpush.msra.mxu1 %v214_v11 }
  0x96   :  { %342 = vmatpush.msra.mxu2 %v221_v6  ;;  %279 = vmatpush.msra.mxu0 %v216_v7 }
  0x97   :  { %123 = vadd.xlane.f32.xlu2 %v115_v34  ;;  %119 = vadd.xlane.f32.xlu0 %v113_v35 }
  0x98   :  { %343 = vmatpush.msra.mxu2 %v218_v9  ;;  %411 = vmatpush.msra.mxu3 %v216_v7 }
  0x99   :  { %280 = vmatpush.msra.mxu0 %v213_v10  ;;  %313 = vmatpush.msra.mxu1 %v211_v14 }
  0x9a   :  { %344 = vmatpush.msra.mxu2 %v215_v12  ;;  %412 = vmatpush.msra.mxu3 %v213_v10 }
  0x9b   :  { %281 = vmatpush.msra.mxu0 %v210_v13 }
  0x9c   :  { %345 = vmatpush.msra.mxu2 %v212_v15  ;;  %413 = vmatpush.msra.mxu3 %v210_v13 }
  0x9f   :  { %125 = vadd.xlane.f32.xlu0 %v116_v37 }
 0x102   :  { %v122_v16 = vpop.xlane.xlu1 %121  ;;  %v118_v18 = vpop.xlane.xlu2 %117 }
 0x103   :  { %v129_v19 = vmul.f32 %v122_v16, %v621_v17  ;;  %v127_v20 = vmul.f32 %v118_v18, %v621_v17 }
 0x105   :  { %v134_v21 = vadd.f32 1e-05, %v129_v19  ;;  %v132_v24 = vadd.f32 1e-05, %v127_v20 }
 0x107   :  { %428 = vrsqrt.f32 %v134_v21  ;;  %vm143_vm2 = vweird.f32 %v132_v24  ;;  %vm163_vm4 = vweird.f32 %v134_v21 }
 0x108   :  { %430 = vrsqrt.f32 %v132_v24 }
 0x10a   :  { %v124_v25 = vpop.xlane.xlu2 %123  ;;  %v120_v26 = vpop.xlane.xlu0 %119 }
 0x10b   :  { %v130_v27 = vmul.f32 %v124_v25, %v621_v17  ;;  %v128_v28 = vmul.f32 %v120_v26, %v621_v17 }
 0x10d   :  { %v429_v29 = vpop.eup %428  ;;  %v135_v30 = vadd.f32 1e-05, %v130_v27  ;;  %v133_v33 = vadd.f32 1e-05, %v128_v28 }
 0x10e   :  { %v431_v34 = vpop.eup %430  ;;  %v158_v35 = vmul.f32 %v429_v29, %v134_v21  ;;  %vm164_vm5 = vweird.f32 %v429_v29 }
 0x10f   :  { %v138_v37 = vmul.f32 %v431_v34, %v132_v24  ;;  %432 = vrsqrt.f32 %v135_v30  ;;  %vm144_vm1 = vweird.f32 %v431_v34  ;;  %vm153_vm7 = vweird.f32 %v133_v33  ;;  %vm654_vm8 = vmor %vm163_vm4, %vm164_vm5 }
 0x110   :  { %434 = vrsqrt.f32 %v133_v33  ;;  %v159_v39 = vmul.f32 %v429_v29, %v158_v35  ;;  %vm145_vm3 = vmor %vm143_vm2, %vm144_vm1  ;;  %vm173_vm10 = vweird.f32 %v135_v30 }
 0x111   :  { %v139_v38 = vmul.f32 %v431_v34, %v138_v37 }
 0x112   :  { %v126_v40 = vpop.xlane.xlu0 %125  ;;  %v160_v47 = vmul.f32 0.5, %v159_v39 }
 0x113   :  { %v140_v41 = vmul.f32 0.5, %v139_v38  ;;  %v131_v42 = vmul.f32 %v126_v40, %v621_v17 }
 0x114   :  { %v161_v56 = vsub.f32 1.5, %v160_v47 }
 0x115   :  { %v433_v43 = vpop.eup %432  ;;  %v141_v44 = vsub.f32 1.5, %v140_v41  ;;  %v136_v45 = vadd.f32 1e-05, %v131_v42 }
 0x116   :  { %v435_v46 = vpop.eup %434  ;;  %v168_v49 = vmul.f32 %v433_v43, %v135_v30  ;;  %v162_v62 = vmul.f32 %v429_v29, %v161_v56  ;;  %vm174_vm11 = vweird.f32 %v433_v43 }
 0x117   :  { %v142_v48 = vmul.f32 %v431_v34, %v141_v44  ;;  %v148_v50 = vmul.f32 %v435_v46, %v133_v33  ;;  %436 = vrsqrt.f32 %v136_v45  ;;  %vm154_vm6 = vweird.f32 %v435_v46  ;;  %vm175_vm12 = vmor %vm173_vm10, %vm174_vm11 }
 0x118   :  { %v169_v17 = vmul.f32 %v433_v43, %v168_v49  ;;  %vm155_vm9 = vmor %vm153_vm7, %vm154_vm6  ;;  %v166_v4 = vsel %vm654_vm8, %v429_v29, %v162_v62  ;;  %vm183_vm13 = vweird.f32 %v136_v45 }
 0x119   :  { %v146_v52 = vsel %vm145_vm3, %v431_v34, %v142_v48  ;;  %v149_v53 = vmul.f32 %v435_v46, %v148_v50  ;;  %v189_v9 = vmul.f32 %v166_v4, %v625_v22 }
 0x11a   :  { %v187_v54 = vmul.f32 %v146_v52, %v627_v23  ;;  %v170_v0 = vmul.f32 0.5, %v169_v17 }
 0x11b   :  { %v150_v57 = vmul.f32 0.5, %v149_v53  ;;  %v198_v12 = vmul.f32 %v424_v51, %v189_v9 }
 0x11c   :  { %v196_v58 = vmul.f32 %v424_v51, %v187_v54  ;;  %v171_v5 = vsub.f32 1.5, %v170_v0 }
 0x11d   :  { %v437_v59 = vpop.eup %436  ;;  %v151_v60 = vsub.f32 1.5, %v150_v57  ;;  %v207_v14 = vadd.f32 %v425_v55, %v198_v12 }
 0x11e   :  { %v205_v61 = vadd.f32 %v425_v55, %v196_v58  ;;  %v178_v23 = vmul.f32 %v437_v59, %v136_v45  ;;  %v172_v10 = vmul.f32 %v433_v43, %v171_v5  ;;  %vm184_vm14 = vweird.f32 %v437_v59 }
 0x11f   :  { %v152_v1 = vmul.f32 %v435_v46, %v151_v60  ;;  %vm185_vm15 = vmor %vm183_vm13, %vm184_vm14 }
 0x120   :  { %282 = vmatmul.f32.vlgmr.msra.gmra.mxu0 %v205_v61  ;;  %314 = vmatmul.f32.vlgmr.msra.gmra.mxu1 %v205_v61  ;;  %v179_v6 = vmul.f32 %v437_v59, %v178_v23  ;;  %v176_v13 = vsel %vm175_vm12, %v433_v43, %v172_v10 }
 0x121   :  { %v156_v2 = vsel %vm155_vm9, %v435_v46, %v152_v1  ;;  %346 = vmatmul.f32.vlgmr.msra.gmra.mxu2 %v205_v61  ;;  %v190_v15 = vmul.f32 %v176_v13, %v635_v31  ;;  %v258_v31 = vld [vmem:[%s677_s4] sm:$0x7]  ;;  %s575_s4 = smov [#allocation10]  }
 0x122   :  { %v188_v3 = vmul.f32 %v156_v2, %v637_v32  ;;  %v180_v11 = vmul.f32 0.5, %v179_v6  ;;  %v260_v25 = vperm.slane %v258_v31, 0  ;;  %v261_v26 = vperm.slane %v258_v31, 1  ;;  %s381_s15 = sshll.u32 %s575_s4, 4  ;;  %s382_s15 = int_to_ptr.vmem [resolvable:$true] %s381_s15 }
 0x123   :  { %v199_v22 = vmul.f32 %v424_v51, %v190_v15 }
 0x124   :  { %v197_v7 = vmul.f32 %v424_v51, %v188_v3  ;;  %v181_v32 = vsub.f32 1.5, %v180_v11 }
 0x125   :  { %v208_v19 = vadd.f32 %v425_v55, %v199_v22 }
 0x126   :  { %v206_v8 = vadd.f32 %v425_v55, %v197_v7  ;;  %v182_v16 = vmul.f32 %v437_v59, %v181_v32 }
 0x128   :  { %285 = vmatmul.f32.vlgmr.msra.gmra.mxu3 %v206_v8  ;;  %317 = vmatmul.f32.gmra.mxu1 %v206_v8  ;;  %v186_v18 = vsel %vm185_vm15, %v437_v59, %v182_v16 }
 0x129   :  { %349 = vmatmul.f32.gmra.mxu2 %v206_v8  ;;  %v191_v20 = vmul.f32 %v186_v18, %v644_v36  ;;  %v262_v36 = vperm.slane %v258_v31, 2 }
 0x12b   :  { %v200_v21 = vmul.f32 %v424_v51, %v191_v20 }
 0x12d   :  { %v209_v24 = vadd.f32 %v425_v55, %v200_v21 }
 0x130   :  { %288 = vmatmul.f32.gmra.mxu3 %v207_v14  ;;  %320 = vmatmul.f32.gmra.mxu1 %v207_v14 }
 0x131   :  { %352 = vmatmul.f32.gmra.mxu2 %v207_v14 }
 0x138   :  { %291 = vmatmul.f32.gmra.mxu3 %v208_v19  ;;  %323 = vmatmul.f32.gmra.mxu1 %v208_v19 }
 0x139   :  { %355 = vmatmul.f32.gmra.mxu2 %v208_v19 }
 0x140   :  { %294 = vmatmul.f32.gmra.mxu3 %v209_v24  ;;  %326 = vmatmul.f32.gmra.mxu1 %v209_v24 }
 0x141   :  { %358 = vmatmul.f32.gmra.mxu2 %v209_v24 }
 0x19d   :  { %v283_v27 = vpop.f32.mrf.mxu0  ;;  %v315_v28 = vpop.f32.mrf.mxu1 }
 0x19e   :  { %v284_v29 = vadd.f32 %v283_v27, %v260_v25  ;;  %v316_v30 = vadd.f32 %v315_v28, %v261_v26 }
 0x1a0   :  { %362 = vst [vmem:[#allocation10] sm:$0xff] %v284_v29 }
 0x1a1   :  { %363 = vst [vmem:[#allocation10 + $0x8] sm:$0xff] %v316_v30 }
 0x1a4   :  { %v347_v33 = vpop.f32.mrf.mxu2 }
 0x1a5   :  { %v348_v34 = vadd.f32 %v347_v33, %v262_v36  ;;  %v318_v35 = vpop.f32.mrf.mxu1 }
 0x1a6   :  { %v319_v37 = vadd.f32 %v318_v35, %v261_v26 }
 0x1a7   :  { %364 = vst [vmem:[#allocation10 + $0x10] sm:$0xff] %v348_v34 }
 0x1a8   :  { %366 = vst [vmem:[#allocation10 + $0x20] sm:$0xff] %v319_v37 }
 0x1ab   :  { %v286_v38 = vpop.f32.mrf.mxu3 }
 0x1ac   :  { %v287_v39 = vadd.f32 %v286_v38, %v260_v25  ;;  %v350_v40 = vpop.f32.mrf.mxu2 }
 0x1ad   :  { %v351_v41 = vadd.f32 %v350_v40, %v262_v36  ;;  %v321_v42 = vpop.f32.mrf.mxu1 }
 0x1ae   :  { %365 = vst [vmem:[#allocation10 + $0x18] sm:$0xff] %v287_v39  ;;  %v322_v43 = vadd.f32 %v321_v42, %v261_v26 }
 0x1af   :  { %367 = vst [vmem:[#allocation10 + $0x28] sm:$0xff] %v351_v41 }
 0x1b0   :  { %369 = vst [vmem:[#allocation10 + $0x38] sm:$0xff] %v322_v43 }
 0x1b3   :  { %v289_v44 = vpop.f32.mrf.mxu3 }
 0x1b4   :  { %v290_v45 = vadd.f32 %v289_v44, %v260_v25  ;;  %v353_v46 = vpop.f32.mrf.mxu2 }
 0x1b5   :  { %v354_v47 = vadd.f32 %v353_v46, %v262_v36  ;;  %v324_v48 = vpop.f32.mrf.mxu1 }
 0x1b6   :  { %368 = vst [vmem:[#allocation10 + $0x30] sm:$0xff] %v290_v45  ;;  %v325_v49 = vadd.f32 %v324_v48, %v261_v26 }
 0x1b7   :  { %370 = vst [vmem:[#allocation10 + $0x40] sm:$0xff] %v354_v47 }
 0x1b8   :  { %372 = vst [vmem:[#allocation10 + $0x50] sm:$0xff] %v325_v49 }
 0x1bb   :  { %v292_v50 = vpop.f32.mrf.mxu3 }
 0x1bc   :  { %v293_v51 = vadd.f32 %v292_v50, %v260_v25  ;;  %v356_v52 = vpop.f32.mrf.mxu2 }
 0x1bd   :  { %v357_v53 = vadd.f32 %v356_v52, %v262_v36  ;;  %v327_v54 = vpop.f32.mrf.mxu1 }
 0x1be   :  { %371 = vst [vmem:[#allocation10 + $0x48] sm:$0xff] %v293_v51  ;;  %v328_v55 = vadd.f32 %v327_v54, %v261_v26 }
 0x1bf   :  { %373 = vst [vmem:[#allocation10 + $0x58] sm:$0xff] %v357_v53 }
 0x1c0   :  { %375 = vst [vmem:[#allocation10 + $0x68] sm:$0xff] %v328_v55 }
 0x1c3   :  { %v295_v56 = vpop.f32.mrf.mxu3 }
 0x1c4   :  { %v296_v17 = vadd.f32 %v295_v56, %v260_v25  ;;  %v359_v57 = vpop.f32.mrf.mxu2 }
 0x1c5   :  { %v360_v58 = vadd.f32 %v359_v57, %v262_v36 }
 0x1c6   :  { %374 = vst [vmem:[#allocation10 + $0x60] sm:$0xff] %v296_v17 }
 0x1c7   :  { %376 = vst [vmem:[#allocation10 + $0x70] sm:$0xff] %v360_v58 }
 0x1c8   :  { %389 = dma.vmem_to_hbm [thread:$0]  %s382_s15, 1920, %s384_s18, [#allocation4], %s572_s13, %s572_s13, %s573_s14  }
 0x1c9   :  { %564 = dma.done.wait [#allocation4], 1920  }
 0x1ca   :  { %565 = vsyncadd [#allocation4], 4294965376 }
 0x1cb   :  { %394 = vsyncpa [#allocation3], 1 }
 0x1cc   :  { %395 = vsyncpa [#allocation6], 1 }
 0x1cd   :  { %396 = vsyncpa [#allocation9], 1 }
 0x1ce   :  { %397 = vsyncpa [#allocation4], 1 }

</bundles_post_ra>
